<compile_context>
chip_gen: v7x
topology: tpu7x:2x2x1
jax: 0.10.0
libtpu: 0.0.40
codegen_flags: <defaults>
</compile_context>

<pallas_src>
import functools

import jax
import jax.numpy as jnp
from jax.experimental import pallas as pl
from jax.experimental.pallas import tpu as pltpu


def _smooth_kernel(x_ref, o_ref, xpad_ref, rows_ref, *, kernel_size, padding):
    # x_ref   : (H,  W)          whole input image (resident across the strip axis)
    # o_ref   : (TH, Wo)         output row-strip
    # xpad_ref: (Hp, Wp)   f32   zero-padded image, persistent per-image scratch
    # rows_ref: (TH+K-1, Wo) f32 W-pass row sums for the current strip
    k = kernel_size
    h, w = x_ref.shape
    th, wo = o_ref.shape
    hp, wp = xpad_ref.shape
    thp = th + k - 1

    s = pl.program_id(1)

    @pl.when(s == 0)
    def _fill_padded_image():
        # Halo-only zeroing (4 thin slabs); the interior is fully overwritten below.
        # Done once per image (strip 0), which is megacore-safe since every batch
        # element executes its own strip 0 on its own core.
        if padding > 0:
            zrow = jnp.zeros((padding, wp), jnp.float32)
            xpad_ref[0:padding, :] = zrow                      # top halo rows
            xpad_ref[padding + h:hp, :] = zrow                 # bottom halo rows
            zcol = jnp.zeros((h, padding), jnp.float32)
            xpad_ref[padding:padding + h, 0:padding] = zcol    # left halo columns
            xpad_ref[padding:padding + h, padding + w:wp] = zcol  # right halo columns
        xpad_ref[padding:padding + h, padding:padding + w] = (
            x_ref[...].astype(jnp.float32))

    # ---- W-pass: K-wide horizontal (lane-axis) sums of the padded rows feeding this
    # strip.  Shifted *ref* slices keep the cost on the vld slot; the result streams
    # into the small rows scratch.
    row0 = s * th
    if th % 8 == 0:
        row0 = pl.multiple_of(row0, 8)
    acc = xpad_ref[pl.ds(row0, thp), 0:wo]
    for dj in range(1, k):
        acc = acc + xpad_ref[pl.ds(row0, thp), dj:dj + wo]
    rows_ref[...] = acc

    # ---- H-pass: K-tall vertical (sublane-axis) sums of the row sums.
    out = rows_ref[0:th, :]
    for di in range(1, k):
        out = out + rows_ref[di:di + th, :]
    o_ref[...] = out.astype(o_ref.dtype)


def _pick_strip_height(ho):
    # Sublane-aligned (multiple of 8) strip height that divides Ho exactly, capped at
    # 128 rows so per-step values stay small; otherwise a single full-height strip
    # (block dim == full array dim is always legal).
    if ho <= 128 or ho % 8 != 0:
        return ho
    best = 8
    for cand in range(8, 129, 8):
        if ho % cand == 0:
            best = cand
    return best


def image_smoothing(image, kernel_size=5, padding=2):
    """Equivalent of ImageSmoothing.forward: conv2d of an (N,1,H,W) image with an
    all-ones (1,1,K,K) weight, stride=1, padding=`padding`."""
    n, c, h, w = image.shape
    assert c == 1, "ImageSmoothing uses a (1,1,K,K) weight => single input channel"

    ho = h + 2 * padding - kernel_size + 1
    wo = w + 2 * padding - kernel_size + 1
    hp = h + 2 * padding
    wp = w + 2 * padding
    assert ho > 0 and wo > 0

    # Metadata-only squeeze of the size-1 channel axis: native (N, H, W) layout with
    # W on lanes, H on sublanes.  No HBM transpose passes.
    x = image.reshape(n, h, w)

    th = _pick_strip_height(ho)
    n_strips = ho // th
    thp = th + kernel_size - 1

    # VMEM budget: padded-image scratch + rows scratch + double-buffered in/out
    # blocks, with slack for (8,128) tile padding; capped below physical VMEM.
    itemsize = jnp.dtype(image.dtype).itemsize
    est = (hp * wp * 4 + thp * wo * 4
           + 2 * h * w * itemsize + 2 * th * wo * itemsize)
    try:
        vmem_cap = pltpu.get_tpu_info().vmem_capacity_bytes
    except Exception:
        vmem_cap = 64 * 1024 * 1024
    vmem_limit = int(min(max(1.5 * est + (4 << 20), 32 << 20), 0.85 * vmem_cap))

    kernel = functools.partial(_smooth_kernel, kernel_size=kernel_size,
                               padding=padding)

    out = pl.pallas_call(
        kernel,
        out_shape=jax.ShapeDtypeStruct((n, ho, wo), image.dtype),
        grid_spec=pltpu.PrefetchScalarGridSpec(
            num_scalar_prefetch=0,
            grid=(n, n_strips),
            in_specs=[
                # Whole image per batch element; the block index is constant along the
                # strip axis, so it is DMA'd once per image and stays resident.
                pl.BlockSpec((None, h, w), lambda b, s: (b, 0, 0)),
            ],
            out_specs=pl.BlockSpec((None, th, wo), lambda b, s: (b, s, 0)),
            scratch_shapes=[
                pltpu.VMEM((hp, wp), jnp.float32),   # padded image (per-image)
                pltpu.VMEM((thp, wo), jnp.float32),  # W-pass row sums (per-strip)
            ],
        ),
        compiler_params=pltpu.CompilerParams(
            # Batch axis split across TensorCores; the strip axis reuses the per-image
            # padded scratch, so it must stay sequential ("arbitrary").
            dimension_semantics=("parallel", "arbitrary"),
            vmem_limit_bytes=vmem_limit,
        ),
    )(x)

    # Metadata-only reshape back to NCHW.
    return out.reshape(n, 1, ho, wo)


def _reference(image, kernel_size=5, padding=2):
    # Pure-JAX reference (cross-correlation with an all-ones weight == the torch conv).
    weight = jnp.ones((1, 1, kernel_size, kernel_size), image.dtype)
    return jax.lax.conv_general_dilated(
        image, weight, window_strides=(1, 1),
        padding=[(padding, padding), (padding, padding)],
        dimension_numbers=("NCHW", "OIHW", "NCHW"))


if __name__ == "__main__":
    key = jax.random.PRNGKey(0)
    kernel_size = 5
    # Shapes consistent with the module: weight is (1,1,K,K) => channels must be 1.
    x = jax.random.normal(key, (2, 1, 16, 16), dtype=jnp.float32)

    out = image_smoothing(x, kernel_size=kernel_size, padding=2)
    out = jax.block_until_ready(out)

    ref = _reference(x, kernel_size=kernel_size, padding=2)
    assert out.shape == ref.shape, (out.shape, ref.shape)
    assert jnp.allclose(out, ref, atol=1e-4, rtol=1e-4), "mismatch vs reference"

    print("KERNEL_OK")
</pallas_src>

<mosaic_0001>
module attributes {stable_mosaic.version = 11 : i64} {
  func.func @_smooth_kernel(%arg0: i32, %arg1: i32, %arg2: memref<1x16x16xf32, #tpu.memory_space<vmem>>, %arg3: memref<1x16x16xf32, #tpu.memory_space<vmem>>, %arg4: memref<20x20xf32, #tpu.memory_space<vmem>>, %arg5: memref<20x16xf32, #tpu.memory_space<vmem>>) attributes {dimension_semantics = [#tpu.dimension_semantics<parallel>, #tpu.dimension_semantics<arbitrary>], iteration_bounds = array<i64: 2, 1>, scalar_prefetch = 0 : i64, scratch_operands = 2 : i64, tpu.core_type = #tpu.core_type<tc>, window_params = [{transform_indices = @transform_0, window_bounds = array<i64: 1, 16, 16>}, {transform_indices = @transform_1, window_bounds = array<i64: 1, 16, 16>}]} {
    %c0_i32 = arith.constant 0 : i32
    %0 = arith.cmpi eq, %arg1, %c0_i32 : i32
    %1 = arith.extui %0 : i1 to i32
    %c0_i32_0 = arith.constant 0 : i32
    %2 = arith.cmpi ne, %1, %c0_i32_0 : i32
    scf.if %2 {
      %cst = arith.constant 0.000000e+00 : f32
      %32 = vector.broadcast %cst : f32 to vector<2x20xf32>
      %c0_16 = arith.constant 0 : index
      %c0_17 = arith.constant 0 : index
      %33 = vector.load %arg4[%c0_16, %c0_17] : memref<20x20xf32, #tpu.memory_space<vmem>>, vector<2x20xf32>
      tpu.vector_store %arg4[%c0_16, %c0_17], %32 {strides = array<i32>} : memref<20x20xf32, #tpu.memory_space<vmem>>, vector<2x20xf32>,
      %c18 = arith.constant 18 : index
      %c0_18 = arith.constant 0 : index
      %34 = vector.load %arg4[%c18, %c0_18] : memref<20x20xf32, #tpu.memory_space<vmem>>, vector<2x20xf32>
      tpu.vector_store %arg4[%c18, %c0_18], %32 {strides = array<i32>} : memref<20x20xf32, #tpu.memory_space<vmem>>, vector<2x20xf32>,
      %cst_19 = arith.constant 0.000000e+00 : f32
      %35 = vector.broadcast %cst_19 : f32 to vector<16x2xf32>
      %c2_20 = arith.constant 2 : index
      %c0_21 = arith.constant 0 : index
      %36 = vector.load %arg4[%c2_20, %c0_21] : memref<20x20xf32, #tpu.memory_space<vmem>>, vector<16x2xf32>
      tpu.vector_store %arg4[%c2_20, %c0_21], %35 {strides = array<i32>} : memref<20x20xf32, #tpu.memory_space<vmem>>, vector<16x2xf32>,
      %c2_22 = arith.constant 2 : index
      %c18_23 = arith.constant 18 : index
      %37 = vector.load %arg4[%c2_22, %c18_23] : memref<20x20xf32, #tpu.memory_space<vmem>>, vector<16x2xf32>
      tpu.vector_store %arg4[%c2_22, %c18_23], %35 {strides = array<i32>} : memref<20x20xf32, #tpu.memory_space<vmem>>, vector<16x2xf32>,
      %c0_24 = arith.constant 0 : index
      %c0_25 = arith.constant 0 : index
      %c0_26 = arith.constant 0 : index
      %38 = vector.load %arg2[%c0_24, %c0_25, %c0_26] : memref<1x16x16xf32, #tpu.memory_space<vmem>>, vector<1x16x16xf32>
      %39 = vector.shape_cast %38 : vector<1x16x16xf32> to vector<16x16xf32>
      %c2_27 = arith.constant 2 : index
      %c2_28 = arith.constant 2 : index
      %40 = vector.load %arg4[%c2_27, %c2_28] : memref<20x20xf32, #tpu.memory_space<vmem>>, vector<16x16xf32>
      tpu.vector_store %arg4[%c2_27, %c2_28], %39 {strides = array<i32>} : memref<20x20xf32, #tpu.memory_space<vmem>>, vector<16x16xf32>,
    } else {
    }
    %c16_i32 = arith.constant 16 : i32
    %3 = arith.muli %arg1, %c16_i32 : i32
    %4 = tpu.assume_multiple %3, 8 : i32
    %5 = arith.index_cast %4 : i32 to index
    %c0 = arith.constant 0 : index
    %6 = vector.load %arg4[%5, %c0] : memref<20x20xf32, #tpu.memory_space<vmem>>, vector<20x16xf32>
    %7 = arith.index_cast %4 : i32 to index
    %c1 = arith.constant 1 : index
    %8 = vector.load %arg4[%7, %c1] : memref<20x20xf32, #tpu.memory_space<vmem>>, vector<20x16xf32>
    %9 = arith.addf %6, %8 : vector<20x16xf32>
    %10 = arith.index_cast %4 : i32 to index
    %c2 = arith.constant 2 : index
    %11 = vector.load %arg4[%10, %c2] : memref<20x20xf32, #tpu.memory_space<vmem>>, vector<20x16xf32>
    %12 = arith.addf %9, %11 : vector<20x16xf32>
    %13 = arith.index_cast %4 : i32 to index
    %c3 = arith.constant 3 : index
    %14 = vector.load %arg4[%13, %c3] : memref<20x20xf32, #tpu.memory_space<vmem>>, vector<20x16xf32>
    %15 = arith.addf %12, %14 : vector<20x16xf32>
    %16 = arith.index_cast %4 : i32 to index
    %c4 = arith.constant 4 : index
    %17 = vector.load %arg4[%16, %c4] : memref<20x20xf32, #tpu.memory_space<vmem>>, vector<20x16xf32>
    %18 = arith.addf %15, %17 : vector<20x16xf32>
    %c0_1 = arith.constant 0 : index
    %c0_2 = arith.constant 0 : index
    %19 = vector.load %arg5[%c0_1, %c0_2] : memref<20x16xf32, #tpu.memory_space<vmem>>, vector<20x16xf32>
    tpu.vector_store %arg5[%c0_1, %c0_2], %18 {strides = array<i32>} : memref<20x16xf32, #tpu.memory_space<vmem>>, vector<20x16xf32>,
    %c0_3 = arith.constant 0 : index
    %c0_4 = arith.constant 0 : index
    %20 = vector.load %arg5[%c0_3, %c0_4] : memref<20x16xf32, #tpu.memory_space<vmem>>, vector<16x16xf32>
    %c1_5 = arith.constant 1 : index
    %c0_6 = arith.constant 0 : index
    %21 = vector.load %arg5[%c1_5, %c0_6] : memref<20x16xf32, #tpu.memory_space<vmem>>, vector<16x16xf32>
    %22 = arith.addf %20, %21 : vector<16x16xf32>
    %c2_7 = arith.constant 2 : index
    %c0_8 = arith.constant 0 : index
    %23 = vector.load %arg5[%c2_7, %c0_8] : memref<20x16xf32, #tpu.memory_space<vmem>>, vector<16x16xf32>
    %24 = arith.addf %22, %23 : vector<16x16xf32>
    %c3_9 = arith.constant 3 : index
    %c0_10 = arith.constant 0 : index
    %25 = vector.load %arg5[%c3_9, %c0_10] : memref<20x16xf32, #tpu.memory_space<vmem>>, vector<16x16xf32>
    %26 = arith.addf %24, %25 : vector<16x16xf32>
    %c4_11 = arith.constant 4 : index
    %c0_12 = arith.constant 0 : index
    %27 = vector.load %arg5[%c4_11, %c0_12] : memref<20x16xf32, #tpu.memory_space<vmem>>, vector<16x16xf32>
    %28 = arith.addf %26, %27 : vector<16x16xf32>
    %c0_13 = arith.constant 0 : index
    %c0_14 = arith.constant 0 : index
    %c0_15 = arith.constant 0 : index
    %29 = vector.load %arg3[%c0_13, %c0_14, %c0_15] : memref<1x16x16xf32, #tpu.memory_space<vmem>>, vector<1x16x16xf32>
    %30 = vector.shape_cast %29 : vector<1x16x16xf32> to vector<16x16xf32>
    %31 = vector.shape_cast %28 : vector<16x16xf32> to vector<1x16x16xf32>
    tpu.vector_store %arg3[%c0_13, %c0_14, %c0_15], %31 {strides = array<i32>} : memref<1x16x16xf32, #tpu.memory_space<vmem>>, vector<1x16x16xf32>,
    return
  }
  func.func @transform_0(%arg0: i32, %arg1: i32) -> (i32, i32, i32) {
    %c0_i32 = arith.constant 0 : i32
    %c0_i32_0 = arith.constant 0 : i32
    %c0_i32_1 = arith.constant 0 : i32
    return %arg0, %c0_i32, %c0_i32_0 : i32, i32, i32
  }
  func.func @transform_1(%arg0: i32, %arg1: i32) -> (i32, i32, i32) {
    %c0_i32 = arith.constant 0 : i32
    %c0_i32_0 = arith.constant 0 : i32
    return %arg0, %arg1, %c0_i32 : i32, i32, i32
  }
}

</mosaic_0001>

<bundles_post_ra>
// kernel: tpu_custom_call.1
= control target key start
LH: loop header
LB: loop body
LE: loop exit
PB: predicated region body
PF: predicated region fallthrough
CT: control target
= control target key end

     0   :  { %6 = vsyncpa [#allocation5], 0  ;;  %s767_s0 = inlined_call_operand.hbm [shape: f32[2,16,16], index: 0, kind: input, shape index: {}]   ;;  %s768_s1 = inlined_call_operand.hbm [shape: f32[2,16,16], index: 1, kind: output, shape index: {}]  }
   0x1   :  { %8 = vsyncpa [#allocation5 + $0x1], 0 }
   0x2   :  { %9 = vsyncpa [#allocation6], 0 }
   0x3   :  { %11 = vsyncpa [#allocation6 + $0x1], 0  ;;  %s584_s6 = smov 0   ;;  %s586_s7 = smov 0  }
   0x4   :  { %s588_s8 = smov 0   ;;  %s590_s9 = smov 0  }
   0x5   :  { %s592_s10 = smov 0   ;;  %s594_s11 = smov 0  }
   0x6 LB: > { %s359_s12 = sadd.s32 4294967295, %s560_s11   ;;  %s360_s13 = sadd.s32 4294967294, %s560_s11   ;;  %s560_s11 = sphi %s594_s11, %s17_s11   ;;  %s556_s10 = sphi %s592_s10, %s783_s10   ;;  %s552_s9 = sphi %s590_s9, %s782_s9   ;;  %s548_s8 = sphi %s588_s8, %s781_s8   ;;  %s544_s7 = sphi %s586_s7, %s780_s7   ;;  %s540_s6 = sphi %s584_s6, %s779_s6  }
   0x7   : > { %s29_s14 = sadd.s32 1, %s556_s10  ;;  %s36_s15 = sadd.s32 1, %s548_s8 }
   0x8   : > { %p31_p0 = scmp.ge.s32.totalorder %s29_s14, 2  ;;  %p43_p1 = scmp.ne.s32.totalorder %s548_s8, %s544_s7 }
   0x9   : > { %p44_p2 = scmp.eq.s32.totalorder %s560_s11, 0  ;;  %p49_p3 = scmp.ne.s32.totalorder %s544_s7, %s540_s6 }
   0xa   : > { %s785_s14 = smov (%p31_p0, %s29_s14), 0  ;;  %p50_p5 = scmp.eq.s32.totalorder %s359_s12, 0 }
   0xb   : > { %p625_p4 = por %p44_p2, %p43_p1  ;;  %s33_s17 = ssub.s32 %s556_s10, %s785_s14 }
   0xc   : > { %p75_p6 = scmp.eq.s32.totalorder %s359_s12, 1  ;;  %p34_p7 = scmp.eq.s32.totalorder %s33_s17, 0 }
   0xd   : > { %p631_p8 = por %p50_p5, %p49_p3  ;;  %p81_p10 = scmp.eq.s32.totalorder %s360_s13, 1 }
   0xe   : > { %p635_p9 = por %p75_p6, %p43_p1  ;;  %p388_p13 = scmp.lt.s32.totalorder %s560_s11, 2 }
   0xf   : > { %s640_s20 = scalar_select %p34_p7, %s548_s8, %s36_s15  }
  0x10   : > { %s772_s19 = scalar_select %p635_p9, 1, 0 }
  0x11   : > { %p642_p11 = por %p81_p10, %p49_p3  ;;  %s101_s22 = sand.u32 1, %s548_s8  }
  0x12   : > { %s363_s23 = sshll.u32 %s101_s22, 4  ;;  %s374_s24 = sshll.u32 %s556_s10, 8 }
  0x13   : > { %s773_s21 = scalar_select %p642_p11, 1, 0 }
  0x14   : > { %s653_s27 = scalar_lea.hbm %s767_s0, %s374_s24  ;;  %s105_s28 = scalar_lea.vmem [#allocation4], %s363_s23 }
  0x15   : > { %s112_s29 = sshll.u32 %s105_s28, 4  ;;  %p659_p0 = pnand %p388_p13, %p625_p4  ;;  %s655_s29 = int_to_ptr.vmem [resolvable:$true] %s112_s29 }
  0x16   : > { %s664_s2 = scalar_lea.sflag [#allocation5], %s101_s22  ;;  %s448_s3 = scalar_lea.hbm %s653_s27, 256 }
  0x17   : > { %p449_p2 = scmp.ne.s32.totalorder %s653_s27, %s448_s3  ;;  %p450_p3 = pneg %p659_p0 }
  0x18   : > { %s453_s12 = scalar_lea.hbm %s767_s0, 512  ;;  %p454_p4 = scmp.lt.u32.totalorder %s653_s27, %s767_s0 }
  0x19   : > { %p451_p5 = pnand %p450_p3, %p449_p2  ;;  %p455_p7 = scmp.lt.u32.totalorder %s453_s12, %s448_s3 }
  0x1a   : > { %p457_p13 = scmp.lt.u32.totalorder %s448_s3, %s653_s27 }
  0x1b   : > { %p452_p6 = pneg %p451_p5  ;;  %p456_p10 = por %p455_p7, %p454_p4 }
  0x1d   : > { %p458_p12 = por %p457_p13, %p456_p10 }
  0x1f   : > { %p459_p1 = pnand %p458_p12, %p452_p6 }
  0x21   : > { %462 = shalt.err (!%p459_p1)
}
  0x22   : > { %s463_s16 = scalar_lea.vmem %s655_s29, 256  ;;  %s562_s17 = smov [#allocation4]  }
  0x23   : > { %p464_p2 = scmp.ne.s32.totalorder %s655_s29, %s463_s16  ;;  %s468_s22 = sshll.u32 %s562_s17, 4  ;;  %s469_s22 = int_to_ptr.vmem [resolvable:$false] %s468_s22 }
  0x24   : > { %s470_s23 = scalar_lea.vmem %s469_s22, 512  ;;  %p471_p9 = scmp.lt.s32.totalorder %s655_s29, %s469_s22 }
  0x25   : > { %p466_p5 = pnand %p464_p2, %p450_p3  ;;  %p472_p4 = scmp.lt.s32.totalorder %s470_s23, %s463_s16 }
  0x27   : > { %p467_p11 = pneg %p466_p5  ;;  %p473_p7 = por %p472_p4, %p471_p9 }
  0x29   : > { %p474_p10 = pnand %p473_p7, %p467_p11 }
  0x2b   : > { %477 = shalt.err (!%p474_p10)
}
  0x2c   : > { %s563_s24 = smov 128   ;;  %s564_s25 = smov 8  }
  0x2d   : > { %383 = dma.hbm_to_vmem [thread:$0]  (!%p659_p0), %s653_s27, 256, %s655_s29, %s664_s2, %s563_s24, %s563_s24, %s564_s25  }
  0x2e   : > { %p120_p12 = scmp.lt.s32.totalorder %s560_s11, 3  ;;  %p775_p1 = scmp.ge.s32.totalorder %s560_s11, 1 }
  0x30   : > { %p121_p3 = pnand %p775_p1, %p120_p12 }
  0x31   : > { %s696_s26 = sand.u32 (!%p121_p3), 1, %s544_s7  }
  0x32   : > { %124 = sbr.rel (%p121_p3) target bundleno = 355 (0x163), region = 24  ;;  %s367_s28 = sshll.u32 (!%p121_p3), %s696_s26, 4 }
  0x33   : > { %s127_s3 = scalar_lea.sflag (!%p121_p3), [#allocation5], %s696_s26  ;;  %s130_s4 = scalar_lea.vmem (!%p121_p3), [#allocation4], %s367_s28 }
  0x39   : > { %531 = dma.done.wait (%p631_p8), %s127_s3, 256  }
  0x3a   : > { %533 = vsyncadd (%p631_p8), %s127_s3, 4294967040  ;;  %vm154_vm0 = vcmask 156672   ;;  %vm157_vm1 = vcmask 15360   ;;  %vm160_vm2 = vcmask 162960   ;;  %v565_v0 = vmov 0.0   ;;  %v163_v1 = vld [vmem:[%s130_s4] sm:$0xff] }
  0x3b   : > { %155 = vst.msk [vmem:[#allocation2] sm:$0x3] %vm154_vm0, %v565_v0  ;;  %156 = vst.msk [vmem:[#allocation2 + $0x12] sm:$0x3] %vm154_vm0, %v565_v0  ;;  %s566_s27 = smov 2   ;;  %v164_v2 = vld [vmem:[%s130_s4 + $0x8] sm:$0xff] }
  0x3c   : > { %158 = vst.msk [vmem:[#allocation2 + $0x2] sm:$0xff] %vm157_vm1, %v565_v0  ;;  %159 = vst.msk [vmem:[#allocation2 + $0xa] sm:$0xff] %vm157_vm1, %v565_v0  ;;  %167 = vrot.lane.b32.xlu0 %v163_v1, %s566_s27  ;;  %vm173_vm3 = vcmask 146448   ;;  %s567_s18 = smov 127   ;;  %s568_s29 = smov 126   ;;  %vm232_vm4 = vcmask 130048  }
  0x3d   : > { %161 = vst.msk [vmem:[#allocation2 + $0x2] sm:$0xff] %vm160_vm2, %v565_v0  ;;  %162 = vst.msk [vmem:[#allocation2 + $0xa] sm:$0xff] %vm160_vm2, %v565_v0  ;;  %s569_s30 = smov 125   ;;  %s570_s2 = smov 124   ;;  %vm235_vm5 = vcmask 125952  }
  0x3e   : > { %s375_s5 = sshll.u32 %s552_s9, 8  ;;  %s148_s12 = scalar_lea.vmem [#allocation7], %s367_s28 }
  0x3f   : > { %s273_s13 = sshll.u32 %s148_s12, 4  ;;  %s715_s17 = scalar_lea.hbm %s768_s1, %s375_s5  ;;  %s717_s13 = int_to_ptr.vmem [resolvable:$true] %s273_s13 }
  0x40   : > { %169 = vrot.lane.b32.xlu0 %v164_v2, %s566_s27  ;;  %s258_s9 = scalar_lea.sflag [#allocation6], %s696_s26  ;;  %s478_s22 = scalar_lea.vmem %s717_s13, 256 }
  0x41   : > { %p479_p8 = scmp.ne.s32.totalorder %s717_s13, %s478_s22  ;;  %p776_p9 = scmp.ne.s32.totalorder %s772_s19, 0 }
  0x42   : > { %s571_s23 = smov [#allocation7]  }
  0x43   : > { %p480_p11 = pnand %p479_p8, %p776_p9  ;;  %s482_s24 = sshll.u32 %s571_s23, 4  ;;  %s483_s24 = int_to_ptr.vmem [resolvable:$false] %s482_s24 }
  0x44   : > { %s484_s25 = scalar_lea.vmem %s483_s24, 512  ;;  %p485_p6 = scmp.lt.s32.totalorder %s717_s13, %s483_s24 }
  0x45   : > { %p481_p0 = pneg %p480_p11  ;;  %p486_p13 = scmp.lt.s32.totalorder %s484_s25, %s478_s22 }
  0x47   : > { %p487_p2 = por %p486_p13, %p485_p6 }
  0x49   : > { %p488_p5 = pnand %p487_p2, %p481_p0 }
  0xae   : > { %v168_v3 = vpop.permute.xlu0 %167 }
  0xaf   : > { %174 = vst.msk [vmem:[#allocation2 + $0x2] sm:$0xff] %vm173_vm3, %v168_v3 }
  0xb2   : > { %v170_v4 = vpop.permute.xlu0 %169 }
  0xb3   : > { %175 = vst.msk [vmem:[#allocation2 + $0xa] sm:$0xff] %vm173_vm3, %v170_v4 }
  0xb6   : > { %v178_v5 = vld [vmem:[#allocation2] sm:$0xff] }
  0xb7   : > { %184 = vrot.lane.b32.xlu1 %v178_v5, %s567_s18 }
  0xba   : > { %v180_v6 = vld [vmem:[#allocation2 + $0x10] sm:$0xf]  ;;  %v179_v7 = vld [vmem:[#allocation2 + $0x8] sm:$0xff] }
  0xbb   : > { %188 = vrot.lane.b32.xlu0 %v180_v6, %s567_s18  ;;  %186 = vrot.lane.b32.xlu1 %v179_v7, %s567_s18 }
  0xbf   : > { %198 = vrot.lane.b32.xlu0 %v179_v7, %s568_s29  ;;  %196 = vrot.lane.b32.xlu1 %v178_v5, %s568_s29 }
  0xc3   : > { %208 = vrot.lane.b32.xlu0 %v178_v5, %s569_s30  ;;  %200 = vrot.lane.b32.xlu1 %v180_v6, %s568_s29 }
  0xc7   : > { %212 = vrot.lane.b32.xlu0 %v180_v6, %s569_s30  ;;  %210 = vrot.lane.b32.xlu1 %v179_v7, %s569_s30 }
  0xcb   : > { %222 = vrot.lane.b32.xlu0 %v179_v7, %s570_s2  ;;  %220 = vrot.lane.b32.xlu1 %v178_v5, %s570_s2 }
  0xcf   : > { %224 = vrot.lane.b32.xlu1 %v180_v6, %s570_s2 }
 0x129   : > { %v185_v8 = vpop.permute.xlu1 %184 }
 0x12a   : > { %v193_v15 = vadd.f32 %v185_v8, %v178_v5 }
 0x12d   : > { %v189_v9 = vpop.permute.xlu0 %188  ;;  %v187_v10 = vpop.permute.xlu1 %186 }
 0x12e   : > { %v194_v16 = vadd.f32 %v187_v10, %v179_v7  ;;  %v195_v21 = vadd.f32 %v189_v9, %v180_v6 }
 0x131   : > { %v199_v11 = vpop.permute.xlu0 %198  ;;  %v197_v12 = vpop.permute.xlu1 %196 }
 0x132   : > { %v206_v19 = vadd.f32 %v199_v11, %v194_v16  ;;  %v205_v20 = vadd.f32 %v197_v12, %v193_v15 }
 0x135   : > { %v209_v13 = vpop.permute.xlu0 %208  ;;  %v201_v14 = vpop.permute.xlu1 %200 }
 0x136   : > { %v217_v22 = vadd.f32 %v209_v13, %v205_v20  ;;  %v207_v26 = vadd.f32 %v201_v14, %v195_v21 }
 0x139   : > { %v213_v17 = vpop.permute.xlu0 %212  ;;  %v211_v18 = vpop.permute.xlu1 %210 }
 0x13a   : > { %v218_v23 = vadd.f32 %v211_v18, %v206_v19  ;;  %v219_v29 = vadd.f32 %v213_v17, %v207_v26 }
 0x13d   : > { %v223_v24 = vpop.permute.xlu0 %222  ;;  %v221_v25 = vpop.permute.xlu1 %220 }
 0x13e   : > { %v230_v27 = vadd.f32 %v223_v24, %v218_v23  ;;  %v229_v28 = vadd.f32 %v221_v25, %v217_v22 }
 0x140   : > { %234 = vst.msk [vmem:[#allocation3 + $0x8] sm:$0xff] %vm232_vm4, %v230_v27  ;;  %233 = vst.msk [vmem:[#allocation3] sm:$0xff] %vm232_vm4, %v229_v28 }
 0x141   : > { %v225_v30 = vpop.permute.xlu1 %224 }
 0x142   : > { %v231_v31 = vadd.f32 %v225_v30, %v219_v29 }
 0x144   : > { %236 = vst.msk [vmem:[#allocation3 + $0x10] sm:$0xf] %vm235_vm5, %v231_v31 }
 0x147   : > { %v237_v32 = vld [vmem:[#allocation3] sm:$0xff]  ;;  %v238_v37 = vld [vmem:[#allocation3 + $0x8] sm:$0xff] }
 0x148   : > { %v239_v33 = vld [vmem:[#allocation3 + $0x1] sm:$0xff] }
 0x149   : > { %v241_v34 = vadd.f32 %v239_v33, %v237_v32  ;;  %v243_v35 = vld [vmem:[#allocation3 + $0x2] sm:$0xff] }
 0x14a   : > { %v247_v39 = vld [vmem:[#allocation3 + $0x3] sm:$0xff] }
 0x14b   : > { %v245_v36 = vadd.f32 %v243_v35, %v241_v34  ;;  %v240_v38 = vld [vmem:[#allocation3 + $0x9] sm:$0xff] }
 0x14c   : > { %v242_v40 = vadd.f32 %v240_v38, %v238_v37  ;;  %v244_v42 = vld [vmem:[#allocation3 + $0xa] sm:$0xff] }
 0x14d   : > { %v249_v41 = vadd.f32 %v247_v39, %v245_v36  ;;  %v251_v43 = vld [vmem:[#allocation3 + $0x4] sm:$0xff]  ;;  %v252_v48 = vld [vmem:[#allocation3 + $0xc] sm:$0xff] }
 0x14e   : > { %v246_v44 = vadd.f32 %v244_v42, %v242_v40  ;;  %v248_v46 = vld [vmem:[#allocation3 + $0xb] sm:$0xff] }
 0x14f   : > { %v253_v45 = vadd.f32 %v251_v43, %v249_v41 }
 0x150   : > { %v250_v47 = vadd.f32 %v248_v46, %v246_v44 }
 0x151   : > { %255 = vst.msk [vmem:[%s148_s12] sm:$0xff] %vm232_vm4, %v253_v45 }
 0x152   : > { %v254_v49 = vadd.f32 %v252_v48, %v250_v47 }
 0x154   : > { %256 = vst.msk [vmem:[%s148_s12 + $0x8] sm:$0xff] %vm232_vm4, %v254_v49 }
 0x155   : > { %491 = shalt.err (!%p488_p5)
}
 0x156   : > { %s492_s28 = scalar_lea.hbm %s715_s17, 256  ;;  %s496_s27 = scalar_lea.hbm %s768_s1, 512 }
 0x157   : > { %p493_p4 = scmp.ne.s32.totalorder %s715_s17, %s492_s28  ;;  %p497_p12 = scmp.lt.u32.totalorder %s715_s17, %s768_s1 }
 0x158   : > { %p498_p1 = scmp.lt.u32.totalorder %s496_s27, %s492_s28  ;;  %p500_p8 = scmp.lt.u32.totalorder %s492_s28, %s715_s17 }
 0x159   : > { %p494_p7 = pnand %p493_p4, %p776_p9 }
 0x15a   : > { %p499_p3 = por %p498_p1, %p497_p12 }
 0x15b   : > { %p495_p10 = pneg %p494_p7 }
 0x15c   : > { %p501_p11 = por %p500_p8, %p499_p3 }
 0x15e   : > { %p502_p0 = pnand %p501_p11, %p495_p10 }
 0x160   : > { %505 = shalt.err (!%p502_p0)
}
 0x161   : > { %s572_s30 = smov 128   ;;  %s573_s2 = smov 8  }
 0x162   : > { %378 = dma.vmem_to_hbm [thread:$0]  (%p776_p9), %s717_s13, 256, %s715_s17, %s258_s9, %s572_s30, %s572_s30, %s573_s2  }
 0x163 PF: > { %s288_s5 = sand.u32 1, %s540_s6   ;;  %p777_p6 = scmp.ne.s32.totalorder %s773_s21, 0 }
 0x164   : > { %p778_p13 = scmp.ge.s32.totalorder %s560_s11, 2  ;;  %s289_s12 = scalar_lea.sflag [#allocation6], %s288_s5 }
 0x166   : > { %p385_p2 = pnand %p778_p13, %p777_p6 }
 0x168   : > { %535 = dma.done.wait (!%p385_p2), %s289_s12, 256  }
 0x169   : > { %537 = vsyncadd (!%p385_p2), %s289_s12, 4294967040  ;;  %s17_s11 = sadd.s32 1, %s560_s11   ;;  %s779_s6 = smov %s544_s7 }
 0x16a   : > { %p14_p5 = scmp.ge.s32.totalorder %s17_s11, 4   ;;  %s780_s7 = smov %s548_s8 }
 0x16b   : > { %s781_s8 = smov %s640_s20  ;;  %s782_s9 = smov %s556_s10 }
 0x16c   : > { %s783_s10 = smov %s785_s14  ;;  %16 = sbr.rel (!%p14_p5) target bundleno = 6 (0x6), region = 74 }
 0x173   :  { %294 = vsyncpa [#allocation5], 1 }
 0x174   :  { %296 = vsyncpa [#allocation5 + $0x1], 1 }
 0x175   :  { %297 = vsyncpa [#allocation6], 1 }
 0x176   :  { %299 = vsyncpa [#allocation6 + $0x1], 1 }

</bundles_post_ra>
